<compile_context>
chip_gen: v7x
topology: tpu7x:2x2x1
jax: 0.10.0
libtpu: 0.0.40
codegen_flags: <defaults>
</compile_context>

<pallas_src>
import jax
import jax.numpy as jnp
from jax.experimental import pallas as pl
from jax.experimental.pallas import tpu as pltpu

INPUTS = 6
NEURONS = [50, 50]
OUTPUTS = [50, 3]
LANE = 128

# Row offsets of each segment inside the packed parameter slab.
# All offsets are multiples of 8 (sublane-group aligned) -> no tile-crossing
# slices, no masked loads for the big matrices.
_WC0_OFF = 0                    # rows [  0,   8): layer-0 Wc (6 real rows + 2 zero)
_W0_OFF = _WC0_OFF + 8          # rows [  8, 136): layer-0 readout  (128, 128)
_WC1_OFF = _W0_OFF + LANE       # rows [136, 264): layer-1 Wc       (128, 128)
_W1_OFF = _WC1_OFF + LANE       # rows [264, 392): layer-1 readout  (128, 128)
_VEC_OFF = _W1_OFF + LANE       # rows [392, 400): packed per-layer vectors
_PARAM_ROWS = _VEC_OFF + 8      # 400

# Rows inside the vector slab.
_G0, _BE0, _B0, _G1, _BE1, _B1 = 0, 1, 2, 3, 4, 5


def _ptrbf_fused_kernel(x_ref, p_ref, o_ref):
    """Fused 2-layer vanilla RBF forward: (B, 6) -> (B, 128) lane-dense."""
    x = x_ref[...]                                             # (B, 6) f32

    # One unmasked (8,128) load for all six small per-layer vectors.
    vec = p_ref[_VEC_OFF:_VEC_OFF + 8, :]                      # (8, 128)
    gamma0, beta0, b0 = vec[_G0:_G0 + 1, :], vec[_BE0:_BE0 + 1, :], vec[_B0:_B0 + 1, :]
    gamma1, beta1, b1 = vec[_G1:_G1 + 1, :], vec[_BE1:_BE1 + 1, :], vec[_B1:_B1 + 1, :]

    # ---- layer 0: exponent = x @ Wc0 + gamma0*||x||^2 + beta0 ----
    wc0 = p_ref[_WC0_OFF:_WC0_OFF + INPUTS, :]                 # (6, 128)
    x2 = jnp.sum(x * x, axis=-1, keepdims=True)                # (B, 1)
    e0 = (jnp.dot(x, wc0, preferred_element_type=jnp.float32)
          + gamma0 * x2 + beta0)                               # (B, 128)
    phi0 = jnp.exp(jnp.minimum(e0, 0.0))                       # EUP exp
    w0 = p_ref[_W0_OFF:_W0_OFF + LANE, :]                      # (128, 128)
    h = jnp.dot(phi0, w0, preferred_element_type=jnp.float32) + b0   # (B, 128)

    # ---- layer 1 (padded lanes of h are exactly 0 by construction) ----
    wc1 = p_ref[_WC1_OFF:_WC1_OFF + LANE, :]                   # (128, 128)
    h2 = jnp.sum(h * h, axis=-1, keepdims=True)                # (B, 1)
    e1 = (jnp.dot(h, wc1, preferred_element_type=jnp.float32)
          + gamma1 * h2 + beta1)                               # (B, 128)
    phi1 = jnp.exp(jnp.minimum(e1, 0.0))
    w1 = p_ref[_W1_OFF:_W1_OFF + LANE, :]                      # (128, 128)
    y = jnp.dot(phi1, w1, preferred_element_type=jnp.float32) + b1   # (B, 128)

    o_ref[...] = y                                             # unmasked lane-dense vst


def ptrbf_nn_forward(x, packed_params):
    """Single grid-less pallas_call; x, params, out all fit in VMEM (~220 KB)."""
    B = x.shape[0]
    vmem = pl.BlockSpec(memory_space=pltpu.MemorySpace.VMEM)
    cost = pl.CostEstimate(
        flops=2 * B * (INPUTS * LANE + 3 * LANE * LANE),
        transcendentals=2 * B * LANE,
        bytes_accessed=4 * (x.size + packed_params.size + B * LANE),
    )
    y_pad = pl.pallas_call(
        _ptrbf_fused_kernel,
        out_shape=jax.ShapeDtypeStruct((B, LANE), jnp.float32),
        in_specs=[vmem, vmem],
        out_specs=vmem,
        cost_estimate=cost,
    )(x, packed_params)
    return y_pad[:, :OUTPUTS[-1]]


def init_params(key, inputs, neurons, outputs):
    """Raw per-layer parameters (centers, sigma, readout W, bias b)."""
    input_vec = [inputs] + outputs[:-1]
    params = []
    for i, n, o in zip(input_vec, neurons, outputs):
        key, k_c, k_s, k_w, k_b = jax.random.split(key, 5)
        centers = jax.random.normal(k_c, (n, i), dtype=jnp.float32)
        sigma = 0.5 + jax.random.uniform(k_s, (n,), dtype=jnp.float32)
        w = jax.random.normal(k_w, (n, o), dtype=jnp.float32) / jnp.sqrt(n)
        b = jax.random.normal(k_b, (o,), dtype=jnp.float32) * 0.01
        params.append((centers, sigma, w, b))
    return params


def _fold_layer(centers, sigma, w, b, in_pad, n_pad, o_pad):
    """Fold + pad one layer.

      gamma_j = -0.5 / sigma_j^2
      Wc[:,j] = -2*gamma_j * c_j          (in_pad, n_pad)
      beta_j  = gamma_j * ||c_j||^2
    so  x @ Wc + gamma*||x||^2 + beta == -||x - c_j||^2 / (2 sigma_j^2).
    Padded neurons: gamma=-1 (finite), beta=0, zero Wc columns, zero readout
    rows -> phi on padded lanes is finite and contributes exactly 0.
    """
    n, i = centers.shape
    o = w.shape[1]
    gamma = -0.5 / (sigma * sigma)                                   # (n,)
    csq = jnp.sum(centers * centers, axis=-1)                        # (n,)
    wc = jnp.zeros((in_pad, n_pad), jnp.float32)
    wc = wc.at[:i, :n].set(centers.T * (-2.0 * gamma)[None, :])
    gamma_row = jnp.full((n_pad,), -1.0, jnp.float32).at[:n].set(gamma)
    beta_row = jnp.zeros((n_pad,), jnp.float32).at[:n].set(gamma * csq)
    b_row = jnp.zeros((o_pad,), jnp.float32).at[:o].set(b)
    w_pad = jnp.zeros((n_pad, o_pad), jnp.float32).at[:n, :o].set(w)
    return wc, w_pad, gamma_row, beta_row, b_row


def pack_params(params):
    """One-time packing of both layers into a single (400, 128) f32 slab."""
    (c0, s0, w0, b0), (c1, s1, w1, b1) = params
    wc0, w0p, g0, be0, bb0 = _fold_layer(c0, s0, w0, b0, 8, LANE, LANE)
    wc1, w1p, g1, be1, bb1 = _fold_layer(c1, s1, w1, b1, LANE, LANE, LANE)
    vec = jnp.zeros((8, LANE), jnp.float32)
    vec = vec.at[_G0].set(g0).at[_BE0].set(be0).at[_B0].set(bb0)
    vec = vec.at[_G1].set(g1).at[_BE1].set(be1).at[_B1].set(bb1)
    packed = jnp.concatenate([wc0, w0p, wc1, w1p, vec], axis=0)
    assert packed.shape == (_PARAM_ROWS, LANE), packed.shape
    return packed


def ptrbf_nn_reference(x, params):
    """Pure-JAX reference computed directly from raw sigma/centers (independent
    of the folded/packed parameterization used by the kernel)."""
    y = x
    for centers, sigma, w, b in params:
        d2 = jnp.sum((y[:, None, :] - centers[None, :, :]) ** 2, axis=-1)   # (B, n)
        phi = jnp.exp(-d2 / (2.0 * sigma * sigma)[None, :])
        y = phi @ w + b[None, :]
    return y


if __name__ == "__main__":
    key = jax.random.PRNGKey(0)
    k_x, k_p = jax.random.split(key)

    B = 8
    x = jax.random.normal(k_x, (B, INPUTS), dtype=jnp.float32)
    params = init_params(k_p, INPUTS, NEURONS, OUTPUTS)
    packed = jax.block_until_ready(pack_params(params))   # one-time prep, not per call

    fwd = jax.jit(ptrbf_nn_forward)
    y = jax.block_until_ready(fwd(x, packed))
    y_ref = ptrbf_nn_reference(x, params)

    assert y.shape == (B, OUTPUTS[-1]), y.shape
    assert bool(jnp.all(jnp.isfinite(y)))
    assert jnp.allclose(y, y_ref, atol=1e-4, rtol=1e-4), float(jnp.max(jnp.abs(y - y_ref)))

    print("KERNEL_OK")
</pallas_src>

<mosaic_0001>
module attributes {stable_mosaic.version = 11 : i64} {
  func.func @_ptrbf_fused_kernel(%arg0: memref<8x6xf32, #tpu.memory_space<vmem>>, %arg1: memref<400x128xf32, #tpu.memory_space<vmem>>, %arg2: memref<8x128xf32, #tpu.memory_space<vmem>>) attributes {dimension_semantics = [], scalar_prefetch = 0 : i64, scratch_operands = 0 : i64, tpu.core_type = #tpu.core_type<tc>} {
    %c0 = arith.constant 0 : index
    %c0_0 = arith.constant 0 : index
    %0 = vector.load %arg0[%c0, %c0_0] : memref<8x6xf32, #tpu.memory_space<vmem>>, vector<8x6xf32>
    %c392 = arith.constant 392 : index
    %c0_1 = arith.constant 0 : index
    %1 = vector.load %arg1[%c392, %c0_1] : memref<400x128xf32, #tpu.memory_space<vmem>>, vector<8x128xf32>
    %2 = vector.extract_strided_slice %1 {offsets = [0, 0], sizes = [1, 128], strides = [1, 1]} : vector<8x128xf32> to vector<1x128xf32>
    %3 = vector.extract_strided_slice %1 {offsets = [1, 0], sizes = [1, 128], strides = [1, 1]} : vector<8x128xf32> to vector<1x128xf32>
    %4 = vector.extract_strided_slice %1 {offsets = [2, 0], sizes = [1, 128], strides = [1, 1]} : vector<8x128xf32> to vector<1x128xf32>
    %5 = vector.extract_strided_slice %1 {offsets = [3, 0], sizes = [1, 128], strides = [1, 1]} : vector<8x128xf32> to vector<1x128xf32>
    %6 = vector.extract_strided_slice %1 {offsets = [4, 0], sizes = [1, 128], strides = [1, 1]} : vector<8x128xf32> to vector<1x128xf32>
    %7 = vector.extract_strided_slice %1 {offsets = [5, 0], sizes = [1, 128], strides = [1, 1]} : vector<8x128xf32> to vector<1x128xf32>
    %c0_2 = arith.constant 0 : index
    %c0_3 = arith.constant 0 : index
    %8 = vector.load %arg1[%c0_2, %c0_3] : memref<400x128xf32, #tpu.memory_space<vmem>>, vector<6x128xf32>
    %9 = arith.mulf %0, %0 : vector<8x6xf32>
    %cst = arith.constant dense<0.000000e+00> : vector<8xf32>
    %10 = vector.multi_reduction <add>, %9, %cst [1] : vector<8x6xf32> to vector<8xf32>
    %11 = vector.shape_cast %10 : vector<8xf32> to vector<8x1xf32>
    %cst_4 = arith.constant dense<0.000000e+00> : vector<8x128xf32>
    %12 = tpu.matmul %0, %8, %cst_4 {dimension_numbers = #tpu.dot_dimension_numbers<[1], [0], [0], [1], [0, 0, 1, 1], [], []>} : vector<8x6xf32>, vector<6x128xf32>, vector<8x128xf32> -> vector<8x128xf32>
    %13 = vector.broadcast %2 : vector<1x128xf32> to vector<8x128xf32>
    %14 = vector.broadcast %11 : vector<8x1xf32> to vector<8x128xf32>
    %15 = arith.mulf %13, %14 : vector<8x128xf32>
    %16 = arith.addf %12, %15 : vector<8x128xf32>
    %17 = vector.broadcast %3 : vector<1x128xf32> to vector<8x128xf32>
    %18 = arith.addf %16, %17 : vector<8x128xf32>
    %cst_5 = arith.constant 0.000000e+00 : f32
    %19 = vector.broadcast %cst_5 : f32 to vector<8x128xf32>
    %20 = arith.minimumf %18, %19 : vector<8x128xf32>
    %21 = math.exp %20 : vector<8x128xf32>
    %c8 = arith.constant 8 : index
    %c0_6 = arith.constant 0 : index
    %22 = vector.load %arg1[%c8, %c0_6] : memref<400x128xf32, #tpu.memory_space<vmem>>, vector<128x128xf32>
    %cst_7 = arith.constant dense<0.000000e+00> : vector<8x128xf32>
    %23 = tpu.matmul %21, %22, %cst_7 {dimension_numbers = #tpu.dot_dimension_numbers<[1], [0], [0], [1], [0, 0, 1, 1], [], []>} : vector<8x128xf32>, vector<128x128xf32>, vector<8x128xf32> -> vector<8x128xf32>
    %24 = vector.broadcast %4 : vector<1x128xf32> to vector<8x128xf32>
    %25 = arith.addf %23, %24 : vector<8x128xf32>
    %c136 = arith.constant 136 : index
    %c0_8 = arith.constant 0 : index
    %26 = vector.load %arg1[%c136, %c0_8] : memref<400x128xf32, #tpu.memory_space<vmem>>, vector<128x128xf32>
    %27 = arith.mulf %25, %25 : vector<8x128xf32>
    %cst_9 = arith.constant dense<0.000000e+00> : vector<8xf32>
    %28 = vector.multi_reduction <add>, %27, %cst_9 [1] : vector<8x128xf32> to vector<8xf32>
    %29 = vector.shape_cast %28 : vector<8xf32> to vector<8x1xf32>
    %cst_10 = arith.constant dense<0.000000e+00> : vector<8x128xf32>
    %30 = tpu.matmul %25, %26, %cst_10 {dimension_numbers = #tpu.dot_dimension_numbers<[1], [0], [0], [1], [0, 0, 1, 1], [], []>} : vector<8x128xf32>, vector<128x128xf32>, vector<8x128xf32> -> vector<8x128xf32>
    %31 = vector.broadcast %5 : vector<1x128xf32> to vector<8x128xf32>
    %32 = vector.broadcast %29 : vector<8x1xf32> to vector<8x128xf32>
    %33 = arith.mulf %31, %32 : vector<8x128xf32>
    %34 = arith.addf %30, %33 : vector<8x128xf32>
    %35 = vector.broadcast %6 : vector<1x128xf32> to vector<8x128xf32>
    %36 = arith.addf %34, %35 : vector<8x128xf32>
    %cst_11 = arith.constant 0.000000e+00 : f32
    %37 = vector.broadcast %cst_11 : f32 to vector<8x128xf32>
    %38 = arith.minimumf %36, %37 : vector<8x128xf32>
    %39 = math.exp %38 : vector<8x128xf32>
    %c264 = arith.constant 264 : index
    %c0_12 = arith.constant 0 : index
    %40 = vector.load %arg1[%c264, %c0_12] : memref<400x128xf32, #tpu.memory_space<vmem>>, vector<128x128xf32>
    %cst_13 = arith.constant dense<0.000000e+00> : vector<8x128xf32>
    %41 = tpu.matmul %39, %40, %cst_13 {dimension_numbers = #tpu.dot_dimension_numbers<[1], [0], [0], [1], [0, 0, 1, 1], [], []>} : vector<8x128xf32>, vector<128x128xf32>, vector<8x128xf32> -> vector<8x128xf32>
    %42 = vector.broadcast %7 : vector<1x128xf32> to vector<8x128xf32>
    %43 = arith.addf %41, %42 : vector<8x128xf32>
    %c0_14 = arith.constant 0 : index
    %c0_15 = arith.constant 0 : index
    %44 = vector.load %arg2[%c0_14, %c0_15] : memref<8x128xf32, #tpu.memory_space<vmem>>, vector<8x128xf32>
    tpu.vector_store %arg2[%c0_14, %c0_15], %43 {strides = array<i32>} : memref<8x128xf32, #tpu.memory_space<vmem>>, vector<8x128xf32>,
    return
  }
}

</mosaic_0001>

<bundles_post_ra>
// kernel: ptrbf_nn_forward.1
= control target key start
LH: loop header
LB: loop body
LE: loop exit
PB: predicated region body
PF: predicated region fallthrough
CT: control target
= control target key end

     0   :  { %7 = vsyncpa [#allocation3], 0  ;;  %s825_s0 = inlined_call_operand.hbm [shape: f32[8,6], index: 0, kind: input, shape index: {}]   ;;  %s826_s1 = inlined_call_operand.hbm [shape: f32[400,128], index: 1, kind: input, shape index: {}]   ;;  %s827_s2 = inlined_call_operand.vmem [shape: f32[8,128], index: 2, kind: output, shape index: {}]  }
   0x1   :  { %8 = vsyncpa [#allocation5], 0  ;;  %s720_s9 = smov [#allocation2]   ;;  %s721_s11 = smov [#allocation4]  }
   0x2   :  { %s15_s10 = sshll.u32 %s720_s9, 4  ;;  %s24_s12 = sshll.u32 %s721_s11, 4  ;;  %s16_s10 = int_to_ptr.vmem [resolvable:$true] %s15_s10  ;;  %s742_s12 = int_to_ptr.vmem [resolvable:$true] %s24_s12 }
   0x3   :  { %s672_s15 = scalar_lea.hbm %s825_s0, 128 }
   0x4   :  { %p673_p0 = scmp.ne.s32.totalorder %s825_s0, %s672_s15  ;;  %p676_p1 = scmp.lt.u32.totalorder %s672_s15, %s825_s0 }
   0x6   :  { %p678_p2 = pnand %p676_p1, %p673_p0 }
   0x8   :  { %681 = shalt.err (!%p678_p2)
}
   0x9   :  { %s682_s20 = scalar_lea.vmem %s16_s10, 128  ;;  %p687_p4 = scmp.lt.s32.totalorder %s16_s10, %s16_s10 }
   0xa   :  { %p683_p3 = scmp.ne.s32.totalorder %s16_s10, %s682_s20  ;;  %p688_p5 = scmp.lt.s32.totalorder %s682_s20, %s682_s20 }
   0xc   :  { %p689_p6 = por %p688_p5, %p687_p4 }
   0xe   :  { %p690_p7 = pnand %p689_p6, %p683_p3 }
  0x10   :  { %693 = shalt.err (!%p690_p7)
}
  0x11   :  { %18 = dma.hbm_to_vmem [thread:$0]  %s825_s0, 128, %s16_s10, [#allocation3]  }
  0x12   :  { %s694_s25 = scalar_lea.hbm %s826_s1, 6400 }
  0x13   :  { %p695_p8 = scmp.ne.s32.totalorder %s826_s1, %s694_s25  ;;  %p698_p9 = scmp.lt.u32.totalorder %s694_s25, %s826_s1 }
  0x15   :  { %p700_p10 = pnand %p698_p9, %p695_p8 }
  0x17   :  { %703 = shalt.err (!%p700_p10)
}
  0x18   :  { %s704_s30 = scalar_lea.vmem %s742_s12, 6400  ;;  %p709_p12 = scmp.lt.s32.totalorder %s742_s12, %s742_s12 }
  0x19   :  { %p705_p11 = scmp.ne.s32.totalorder %s742_s12, %s704_s30  ;;  %p710_p13 = scmp.lt.s32.totalorder %s704_s30, %s704_s30 }
  0x1b   :  { %p711_p0 = por %p710_p13, %p709_p12 }
  0x1d   :  { %p712_p1 = pnand %p711_p0, %p705_p11 }
  0x1f   :  { %715 = shalt.err (!%p712_p1)
}
  0x20   :  { %s722_s0 = smov 128   ;;  %s723_s3 = smov 8  }
  0x21   :  { %30 = dma.hbm_to_vmem [thread:$0]  %s826_s1, 6400, %s742_s12, [#allocation5], %s722_s0, %s722_s0, %s723_s3  }
  0x22   :  { %716 = dma.done.wait [#allocation3], 128  }
  0x23   :  { %717 = vsyncadd [#allocation3], 4294967168 }
  0x24   :  { %718 = dma.done.wait [#allocation5], 6400  }
  0x25   :  { %719 = vsyncadd [#allocation5], 4294960896  ;;  %v724_v0 = vmov 0.0   ;;  %vm725_vm0 = vmmov 0   ;;  %v726_v1 = vmov 0.0|0.0   ;;  %vm53_vm1 = vcmask 1045504  }
  0x26   :  { %479 = vmatprep.subr.mxu0 %v724_v0  ;;  %481 = vmatprep.mubr.msk.f32.mxu0 %vm725_vm0, %v724_v0  ;;  %vm41_vm2 = vcmask 48128   ;;  %v39_v2 = vld [vmem:[#allocation4] sm:$0x3f]  ;;  %v37_v3 = vld [vmem:[#allocation2] sm:$0xff]  ;;  %v135_v4 = vld [vmem:[#allocation4 + $0x8] sm:$0xff]  ;;  %v45_v51 = vlaneseq }
  0x27   :  { %589 = vmatprep.subr.bf16.mxu1 %v726_v1  ;;  %516 = vmatprep.mubr.msk.f32.mxu1 %vm725_vm0, %v724_v0  ;;  %v40_v5 = vmul.f32 %v37_v3, %v37_v3  ;;  %v136_v6 = vld [vmem:[#allocation4 + $0x10] sm:$0xff]  ;;  %v137_v7 = vld [vmem:[#allocation4 + $0x18] sm:$0xff]  ;;  %v138_v8 = vld [vmem:[#allocation4 + $0x20] sm:$0xff] }
  0x28   :  { %480 = vmatpush3.msk.msra.mxu0 %vm53_vm1, %v39_v2  ;;  %v590_v9 = vpack.c.bf16 %v136_v6, %v135_v4  ;;  %v593_v11 = vpack.c.bf16 %v138_v8, %v137_v7  ;;  %v139_v12 = vld [vmem:[#allocation4 + $0x28] sm:$0xff]  ;;  %v140_v13 = vld [vmem:[#allocation4 + $0x30] sm:$0xff]  ;;  %v141_v15 = vld [vmem:[#allocation4 + $0x38] sm:$0xff]  ;;  %v797_v52 = vshrl.u32 %v45_v51, 7 }
  0x29   :  { %482 = vmatmul.mubr.msk.f32.vlgmr.msra.gmra.mrb[0].mxu0 %vm41_vm2, %v37_v3  ;;  %613 = vmatprep.subr.bf16.mxu0 %v726_v1  ;;  %v42_v10 = vsel %vm41_vm2, %v40_v5, 0.0  ;;  %v596_v14 = vpack.c.bf16 %v140_v13, %v139_v12  ;;  %v142_v16 = vld [vmem:[#allocation4 + $0x40] sm:$0xff]  ;;  %v143_v18 = vld [vmem:[#allocation4 + $0x48] sm:$0xff]  ;;  %v144_v19 = vld [vmem:[#allocation4 + $0x50] sm:$0xff] }
  0x2a   :  { %551 = vmatprep.mubr.msk.f32.mxu0 %vm725_vm0, %v724_v0  ;;  %43 = vadd.xlane.f32.xlu0 %v42_v10  ;;  %v599_v17 = vpack.c.bf16 %v142_v16, %v141_v15  ;;  %v602_v20 = vpack.c.bf16 %v144_v19, %v143_v18  ;;  %v145_v21 = vld [vmem:[#allocation4 + $0x58] sm:$0xff]  ;;  %v146_v22 = vld [vmem:[#allocation4 + $0x60] sm:$0xff]  ;;  %v147_v24 = vld [vmem:[#allocation4 + $0x68] sm:$0xff]  ;;  %v47_v53 = vsub.s32 0, %v797_v52  ;;  %v129_v57 = vsub.s32 1, %v797_v52 }
  0x2b   :  { %591 = vmatpush3.bf16.msra.mxu1 %v590_v9  ;;  %v605_v23 = vpack.c.bf16 %v146_v22, %v145_v21  ;;  %v148_v25 = vld [vmem:[#allocation4 + $0x70] sm:$0xff]  ;;  %v149_v27 = vld [vmem:[#allocation4 + $0x78] sm:$0xff]  ;;  %v150_v28 = vld [vmem:[#allocation4 + $0x80] sm:$0xff]  ;;  %v153_v8 = vsub.s32 2, %v797_v52 }
  0x2c   :  { %592 = vmatprep.subr.bf16.mxu1 %v726_v1  ;;  %v608_v26 = vpack.c.bf16 %v148_v25, %v147_v24  ;;  %v611_v29 = vpack.c.bf16 %v150_v28, %v149_v27  ;;  %v225_v30 = vld [vmem:[#allocation4 + $0x88] sm:$0xff]  ;;  %v226_v31 = vld [vmem:[#allocation4 + $0x90] sm:$0xff]  ;;  %v227_v32 = vld [vmem:[#allocation4 + $0x98] sm:$0xff] }
  0x2d   :  { %v614_v33 = vpack.c.bf16 %v226_v31, %v225_v30  ;;  %v228_v34 = vld [vmem:[#allocation4 + $0xa0] sm:$0xff]  ;;  %v229_v36 = vld [vmem:[#allocation4 + $0xa8] sm:$0xff]  ;;  %v230_v37 = vld [vmem:[#allocation4 + $0xb0] sm:$0xff] }
  0x2e   :  { %v617_v35 = vpack.c.bf16 %v228_v34, %v227_v32  ;;  %v620_v38 = vpack.c.bf16 %v230_v37, %v229_v36  ;;  %v231_v39 = vld [vmem:[#allocation4 + $0xb8] sm:$0xff]  ;;  %v232_v40 = vld [vmem:[#allocation4 + $0xc0] sm:$0xff]  ;;  %v233_v42 = vld [vmem:[#allocation4 + $0xc8] sm:$0xff]  ;;  %v246_v37 = vsub.s32 3, %v797_v52 }
  0x2f   :  { %594 = vmatpush3.bf16.msra.mxu1 %v593_v11  ;;  %615 = vmatpush3.bf16.msra.mxu0 %v614_v33  ;;  %v623_v41 = vpack.c.bf16 %v232_v40, %v231_v39  ;;  %v234_v43 = vld [vmem:[#allocation4 + $0xd0] sm:$0xff]  ;;  %v235_v45 = vld [vmem:[#allocation4 + $0xd8] sm:$0xff]  ;;  %v236_v46 = vld [vmem:[#allocation4 + $0xe0] sm:$0xff]  ;;  %v321_v39 = vsub.s32 4, %v797_v52 }
  0x30   :  { %595 = vmatprep.subr.bf16.mxu1 %v726_v1  ;;  %616 = vmatprep.subr.bf16.mxu0 %v726_v1  ;;  %v626_v44 = vpack.c.bf16 %v234_v43, %v233_v42  ;;  %v629_v47 = vpack.c.bf16 %v236_v46, %v235_v45  ;;  %v237_v48 = vld [vmem:[#allocation4 + $0xe8] sm:$0xff]  ;;  %v238_v49 = vld [vmem:[#allocation4 + $0xf0] sm:$0xff]  ;;  %v239_v5 = vld [vmem:[#allocation4 + $0xf8] sm:$0xff] }
  0x31   :  { %v632_v50 = vpack.c.bf16 %v238_v49, %v237_v48  ;;  %v800_v54 = vld [vmem:[#allocation4 + $0x188] sm:$0xff]  ;;  %v240_v6 = vld [vmem:[#allocation4 + $0x100] sm:$0xff]  ;;  %v328_v15 = vld [vmem:[#allocation4 + $0x110] sm:$0xff] }
  0x32   :  { %v48_v55 = vrot.slane %v800_v54, %v47_v53  ;;  %v130_v59 = vrot.slane %v800_v54, %v129_v57  ;;  %v635_v7 = vpack.c.bf16 %v240_v6, %v239_v5  ;;  %v154_v9 = vrot.slane %v800_v54, %v153_v8  ;;  %v329_v16 = vld [vmem:[#allocation4 + $0x118] sm:$0xff]  ;;  %v330_v18 = vld [vmem:[#allocation4 + $0x120] sm:$0xff]  ;;  %v331_v19 = vld [vmem:[#allocation4 + $0x128] sm:$0xff] }
  0x33   :  { %597 = vmatpush3.bf16.msra.mxu1 %v596_v14  ;;  %618 = vmatpush3.bf16.msra.mxu0 %v617_v35  ;;  %v327_v14 = vld [vmem:[#allocation4 + $0x108] sm:$0xff]  ;;  %v333_v22 = vld [vmem:[#allocation4 + $0x138] sm:$0xff]  ;;  %v340_v32 = vld [vmem:[#allocation4 + $0x170] sm:$0xff]  ;;  %v322_v42 = vrot.slane %v800_v54, %v321_v39 }
  0x34   :  { %598 = vmatprep.subr.bf16.mxu1 %v726_v1  ;;  %619 = vmatprep.subr.bf16.mxu0 %v726_v1  ;;  %v335_v25 = vld [vmem:[#allocation4 + $0x148] sm:$0xff]  ;;  %v337_v28 = vld [vmem:[#allocation4 + $0x158] sm:$0xff]  ;;  %v342_v35 = vld [vmem:[#allocation4 + $0x180] sm:$0xff] }
  0x35   :  { %v339_v31 = vld [vmem:[#allocation4 + $0x168] sm:$0xff]  ;;  %v341_v34 = vld [vmem:[#allocation4 + $0x178] sm:$0xff] }
  0x36   :  { %v656_v33 = vpack.c.bf16 %v340_v32, %v339_v31  ;;  %v659_v36 = vpack.c.bf16 %v342_v35, %v341_v34 }
  0x37   :  { %600 = vmatpush3.bf16.msra.mxu1 %v599_v17  ;;  %621 = vmatpush3.bf16.msra.mxu0 %v620_v38  ;;  %v638_v17 = vpack.c.bf16 %v328_v15, %v327_v14  ;;  %v247_v38 = vrot.slane %v800_v54, %v246_v37 }
  0x38   :  { %601 = vmatprep.subr.bf16.mxu1 %v726_v1  ;;  %622 = vmatprep.subr.bf16.mxu0 %v726_v1 }
  0x3b   :  { %603 = vmatpush3.bf16.msra.mxu1 %v602_v20  ;;  %624 = vmatpush3.bf16.msra.mxu0 %v623_v41  ;;  %v332_v20 = vld [vmem:[#allocation4 + $0x130] sm:$0xff] }
  0x3c   :  { %604 = vmatprep.subr.bf16.mxu1 %v726_v1  ;;  %625 = vmatprep.subr.bf16.mxu0 %v726_v1  ;;  %v644_v21 = vpack.c.bf16 %v332_v20, %v331_v19 }
  0x3f   :  { %606 = vmatpush3.bf16.msra.mxu1 %v605_v23  ;;  %627 = vmatpush3.bf16.msra.mxu0 %v626_v44  ;;  %v334_v23 = vld [vmem:[#allocation4 + $0x140] sm:$0xff] }
  0x40   :  { %607 = vmatprep.subr.bf16.mxu1 %v726_v1  ;;  %628 = vmatprep.subr.bf16.mxu0 %v726_v1  ;;  %v647_v24 = vpack.c.bf16 %v334_v23, %v333_v22 }
  0x43   :  { %609 = vmatpush3.bf16.msra.mxu1 %v608_v26  ;;  %630 = vmatpush3.bf16.msra.mxu0 %v629_v47  ;;  %v336_v26 = vld [vmem:[#allocation4 + $0x150] sm:$0xff] }
  0x44   :  { %610 = vmatprep.subr.bf16.mxu1 %v726_v1  ;;  %631 = vmatprep.subr.bf16.mxu0 %v726_v1  ;;  %v650_v27 = vpack.c.bf16 %v336_v26, %v335_v25 }
  0x47   :  { %612 = vmatpush3.bf16.msra.mxu1 %v611_v29  ;;  %633 = vmatpush3.bf16.msra.mxu0 %v632_v50  ;;  %v338_v29 = vld [vmem:[#allocation4 + $0x160] sm:$0xff] }
  0x48   :  { %637 = vmatprep.subr.bf16.mxu1 %v726_v1  ;;  %634 = vmatprep.subr.bf16.mxu0 %v726_v1  ;;  %v653_v30 = vpack.c.bf16 %v338_v29, %v337_v28 }
  0x4b   :  { %636 = vmatpush3.bf16.msra.mxu0 %v635_v7 }
  0xb7   :  { %v44_v56 = vpop.xlane.xlu0 %43 }
  0xb8   :  { %v49_v58 = vmul.f32 %v48_v55, %v44_v56 }
  0xfc   :  { %v123_v60 = vpop.f32.mrb[0].mxu0 }
  0xfd   :  { %v124_v61 = vadd.f32 %v123_v60, %v49_v58  ;;  %v483_v62 = vpop.f32.mrb[1].mxu0 }
  0xff   :  { %v131_v63 = vadd.f32 %v130_v59, %v124_v61 }
 0x101   :  { %v132_v2 = vmin.f32 %v131_v63, 0.0 }
 0x103   :  { %v133_v3 = vmul.f32 1.442695, %v132_v2 }
 0x105   :  { %668 = vpow2.f32 %v133_v3 }
 0x10f   :  { %v669_v4 = vpop.eup %668 }
 0x110   :  { %517 = vmatmul.mubr.f32.vlgmr.msra.gmra.mrb[0].mxu1 %v669_v4 }
 0x111   :  { %586 = vmatprep.mubr.msk.f32.mxu1 %vm725_vm0, %v724_v0  ;;  %639 = vmatpush3.bf16.msra.mxu1 %v638_v17  ;;  %v641_v0 = vpack.c.bf16 %v330_v18, %v329_v16 }
 0x112   :  { %640 = vmatprep.subr.bf16.mxu1 %v726_v1 }
 0x115   :  { %642 = vmatpush3.bf16.msra.mxu1 %v641_v0 }
 0x116   :  { %643 = vmatprep.subr.bf16.mxu1 %v726_v1 }
 0x119   :  { %645 = vmatpush3.bf16.msra.mxu1 %v644_v21 }
 0x11a   :  { %646 = vmatprep.subr.bf16.mxu1 %v726_v1 }
 0x11d   :  { %648 = vmatpush3.bf16.msra.mxu1 %v647_v24 }
 0x11e   :  { %649 = vmatprep.subr.bf16.mxu1 %v726_v1 }
 0x121   :  { %651 = vmatpush3.bf16.msra.mxu1 %v650_v27 }
 0x122   :  { %652 = vmatprep.subr.bf16.mxu1 %v726_v1 }
 0x125   :  { %654 = vmatpush3.bf16.msra.mxu1 %v653_v30 }
 0x126   :  { %655 = vmatprep.subr.bf16.mxu1 %v726_v1 }
 0x129   :  { %657 = vmatpush3.bf16.msra.mxu1 %v656_v33 }
 0x12a   :  { %658 = vmatprep.subr.bf16.mxu1 %v726_v1  ;;  %v345_v1 = vsub.s32 5, %v797_v52 }
 0x12c   :  { %v346_v50 = vrot.slane %v800_v54, %v345_v1 }
 0x12d   :  { %660 = vmatpush3.bf16.msra.mxu1 %v659_v36 }
 0x1e3   :  { %v221_v10 = vpop.f32.mrb[0].mxu1 }
 0x1e4   :  { %v222_v11 = vadd.f32 %v221_v10, %v154_v9  ;;  %v518_v12 = vpop.f32.mrb[1].mxu1 }
 0x1e6   :  { %552 = vmatmul.mubr.f32.vlgmr.msra.gmra.mrb[2].mxu0 %v222_v11  ;;  %v241_v13 = vmul.f32 %v222_v11, %v222_v11 }
 0x1e8   :  { %242 = vadd.xlane.f32.xlu0 %v241_v13 }
 0x275   :  { %v243_v40 = vpop.xlane.xlu0 %242 }
 0x276   :  { %v248_v41 = vmul.f32 %v247_v38, %v243_v40 }
 0x2b9   :  { %v315_v43 = vpop.f32.mrb[2].mxu0 }
 0x2ba   :  { %v316_v44 = vadd.f32 %v315_v43, %v248_v41  ;;  %v553_v45 = vpop.f32.mrb[3].mxu0 }
 0x2bc   :  { %v323_v46 = vadd.f32 %v322_v42, %v316_v44 }
 0x2be   :  { %v324_v47 = vmin.f32 %v323_v46, 0.0 }
 0x2c0   :  { %v325_v48 = vmul.f32 1.442695, %v324_v47 }
 0x2c2   :  { %670 = vpow2.f32 %v325_v48 }
 0x2cc   :  { %v671_v49 = vpop.eup %670 }
 0x2cd   :  { %587 = vmatmul.mubr.f32.vlgmr.msra.gmra.mrb[2].mxu1 %v671_v49 }
 0x3a0   :  { %v413_v51 = vpop.f32.mrb[2].mxu1 }
 0x3a1   :  { %v414_v53 = vadd.f32 %v413_v51, %v346_v50  ;;  %v588_v55 = vpop.f32.mrb[3].mxu1 }
 0x3a3   :  { %417 = vst [vmem:[%s827_s2] sm:$0xff] %v414_v53 }
 0x3a4   :  { %422 = vsyncpa [#allocation3], 1 }
 0x3a5   :  { %423 = vsyncpa [#allocation5], 1 }

</bundles_post_ra>
